<compile_context>
chip_gen: v5e
topology: v5e:2x2
jax: 0.10.0
libtpu: 0.0.40
codegen_flags: <defaults>
</compile_context>

<pallas_src>
import functools

import jax
import jax.numpy as jnp
from jax.experimental import pallas as pl
from jax.experimental.pallas import tpu as pltpu


# ---------------------------------------------------------------------------
# Kernel
# ---------------------------------------------------------------------------
def _attention_kernel(out_ref, ctx_ref, wdec_ref, bdec_ref,
                      wout_mix_ref, wout_q_ref, bout_ref,
                      o_ref, attn_ref=None, *, compute_dtype, approx_recip):
    bt, tq, ddec = out_ref.shape
    _, tk, dctx = ctx_ref.shape

    # Query slab for the two linear layers: one (bt*tq, .) MXU matmul each.
    q2 = out_ref[...].reshape(bt * tq, ddec).astype(compute_dtype)
    c = ctx_ref[...].astype(compute_dtype)                       # (bt, Tk, Dctx)

    # ---- dec_w linear: mapped = q @ W_dec^T + b_dec (f32 accumulate).
    mapped = jnp.dot(q2, wdec_ref[...].astype(compute_dtype),
                     preferred_element_type=jnp.float32)
    mapped = (mapped + bdec_ref[...]).reshape(bt, tq, dctx)

    # ---- attention scores: contract the shared feature axis so the MXU
    #      consumes `context` directly (no explicit transpose / XLU pass).
    scores = jnp.einsum('bqd,bkd->bqk', mapped.astype(compute_dtype), c,
                        preferred_element_type=jnp.float32)      # (bt, tq, tk)

    # ---- softmax over the context axis (max-subtracted, f32).
    m = jnp.max(scores, axis=-1, keepdims=True)
    e = jnp.exp(scores - m)
    denom = jnp.sum(e, axis=-1, keepdims=True)
    if approx_recip:
        inv = pl.reciprocal(denom, approx=True)   # EUP slot, near-free
    else:
        inv = 1.0 / denom                         # exact path (tight self-test)
    attn = e * inv
    if attn_ref is not None:
        attn_ref[...] = attn.astype(attn_ref.dtype)

    # ---- mix = attn @ context
    mix = jnp.einsum('bqk,bkd->bqd', attn.astype(compute_dtype), c,
                     preferred_element_type=jnp.float32)         # (bt, tq, dctx)

    # ---- linear_out with the concat eliminated: two MXU pushes, one f32 acc.
    proj = (jnp.dot(mix.reshape(bt * tq, dctx).astype(compute_dtype),
                    wout_mix_ref[...].astype(compute_dtype),
                    preferred_element_type=jnp.float32)
            + jnp.dot(q2, wout_q_ref[...].astype(compute_dtype),
                      preferred_element_type=jnp.float32)
            + bout_ref[...])
    o_ref[...] = jnp.tanh(proj).reshape(bt, tq, ddec).astype(o_ref.dtype)


# ---------------------------------------------------------------------------
# Sizing helpers
# ---------------------------------------------------------------------------
def _tpu_sizing():
    """Return (vmem_budget_bytes, mxu_row_target, min_grid_steps) per generation."""
    vmem_cap = 128 * 1024 * 1024
    chip_name = ""
    try:
        info = pltpu.get_tpu_info()
        vmem_cap = int(getattr(info, "vmem_capacity_bytes", vmem_cap))
        cv = getattr(info, "chip_version", None)
        chip_name = str(getattr(cv, "name", cv) or "").lower()
    except Exception:
        pass
    small_vmem = vmem_cap <= 80 * 1024 * 1024
    if small_vmem or "7" in chip_name:
        # v7x-class: 64 MiB VMEM (leave headroom), 2 TensorCores want >= 2 grid steps.
        return 48 * 1024 * 1024, 256, 2
    if "5" in chip_name:
        # v5e-class: 128x128 MXU pass, 128 MiB VMEM.
        return 96 * 1024 * 1024, 128, 1
    # v6e-class default: 2x256x256 MXU, 128 MiB VMEM.
    return 96 * 1024 * 1024, 256, 1


def _pick_block(n, cap, multiple=1):
    """Largest divisor of n that is <= cap and (== n or a multiple of `multiple`)."""
    cap = max(1, min(n, cap))
    best = 1
    d = 1
    while d * d <= n:
        if n % d == 0:
            for c in (d, n // d):
                if c <= cap and c > best and (c == n or c % multiple == 0):
                    best = c
        d += 1
    return best


# ---------------------------------------------------------------------------
# Wrapper
# ---------------------------------------------------------------------------
def attention_forward(output, context, w_dec_t, b_dec, w_out_t, b_out, *,
                      compute_dtype=jnp.float32, approx_recip=None,
                      attn_dtype=jnp.float32, return_attn=True,
                      block_b=None, block_q=None, interpret=False):
    """output: (B, Tq, Ddec); context: (B, Tk, Dctx);
       w_dec_t: (Ddec, Dctx); b_dec: (1, Dctx);
       w_out_t: (Dctx+Ddec, Ddec); b_out: (1, Ddec).

    For best MXU/DMA efficiency at production sizes, Tq should be a multiple of 16
    and Ddec / Dctx / Tk multiples of 128 (lane-dense loads/stores)."""
    B, Tq, Ddec = output.shape
    Bc, Tk, Dctx = context.shape
    assert Bc == B
    assert w_dec_t.shape == (Ddec, Dctx)
    assert w_out_t.shape == (Dctx + Ddec, Ddec)

    compute_dtype = jnp.dtype(compute_dtype)
    if approx_recip is None:
        approx_recip = (compute_dtype == jnp.dtype(jnp.bfloat16))

    # Split linear_out weight (concat elimination). PyTorch concatenates
    # [mix, output], so the first Dctx rows of W_out^T act on mix.
    # Weight matrices are pre-cast to the MXU operand dtype; biases stay f32
    # so they are added into the f32 accumulators.
    w_dec_c = w_dec_t.astype(compute_dtype)
    w_out_mix = w_out_t[:Dctx].astype(compute_dtype)   # (Dctx, Ddec)
    w_out_q = w_out_t[Dctx:].astype(compute_dtype)     # (Ddec, Ddec)
    b_dec = b_dec.reshape(1, Dctx).astype(jnp.float32)
    b_out = b_out.reshape(1, Ddec).astype(jnp.float32)

    vmem_budget, row_target, min_steps = _tpu_sizing()

    # ---- block_q over Tq (must divide Tq; != Tq requires a multiple of 16).
    q_cap = row_target if block_q is None else block_q
    bq = _pick_block(Tq, q_cap, multiple=16)
    block_q = bq if (bq == Tq or bq % 16 == 0) else Tq

    # ---- block_b over batch so block_b * block_q fills the MXU M dimension.
    b_cap = max(1, row_target // block_q) if block_b is None else block_b
    block_b = _pick_block(B, b_cap)

    # ---- VMEM estimate per grid step (double-buffered tiles + weights + live values).
    in_isz = jnp.dtype(output.dtype).itemsize
    ctx_isz = jnp.dtype(context.dtype).itemsize
    attn_isz = jnp.dtype(attn_dtype).itemsize
    comp_isz = compute_dtype.itemsize

    def est_bytes(bb, bq_):
        rows = bb * bq_
        tiles = (2 * rows * Ddec * in_isz            # query tile
                 + 2 * bb * Tk * Dctx * ctx_isz      # context tile
                 + 2 * rows * Ddec * in_isz)         # projected-output tile
        if return_attn:
            tiles += 2 * rows * Tk * attn_isz
        weights = 2 * ((Ddec * Dctx + Dctx * Ddec + Ddec * Ddec) * comp_isz
                       + (Dctx + Ddec) * 4)
        live = (rows * (3 * Tk + 2 * Dctx + 2 * Ddec) * 4        # f32 intermediates
                + rows * (Tk + Dctx + 2 * Ddec) * comp_isz       # operand casts
                + bb * Tk * Dctx * comp_isz)
        return tiles + weights + live

    # Shrink the batch tile until the estimate fits comfortably in the budget.
    while block_b > 1 and est_bytes(block_b, block_q) > (vmem_budget * 6) // 10:
        block_b = _pick_block(B, block_b - 1)
    # If a single batch element still does not fit, split the Tq axis further.
    while (block_b == 1 and block_q > 16
           and est_bytes(block_b, block_q) > (vmem_budget * 6) // 10):
        nq = _pick_block(Tq, block_q // 2, multiple=16)
        if nq < 16 or nq >= block_q:
            break
        block_q = nq
    # v7x: make sure the "parallel" grid has >= min_steps steps so both TCs get work.
    while (B // block_b) * (Tq // block_q) < min_steps and block_b > 1:
        block_b = _pick_block(B, block_b - 1)

    grid = (B // block_b, Tq // block_q)
    vmem_limit = int(min(vmem_budget,
                         max(32 * 1024 * 1024, 2 * est_bytes(block_b, block_q))))

    # ---- specs
    in_specs = [
        pl.BlockSpec((block_b, block_q, Ddec), lambda b, q: (b, q, 0)),   # query
        pl.BlockSpec((block_b, Tk, Dctx), lambda b, q: (b, 0, 0)),        # context (resident over q)
        pl.BlockSpec((Ddec, Dctx), lambda b, q: (0, 0)),                  # W_dec^T
        pl.BlockSpec((1, Dctx), lambda b, q: (0, 0)),                     # b_dec
        pl.BlockSpec((Dctx, Ddec), lambda b, q: (0, 0)),                  # W_out^T (mix part)
        pl.BlockSpec((Ddec, Ddec), lambda b, q: (0, 0)),                  # W_out^T (query part)
        pl.BlockSpec((1, Ddec), lambda b, q: (0, 0)),                     # b_out
    ]
    # TODO(synk): pipeline_mode=pl.Buffered(1) on the constant-index weight specs
    # would drop their second VMEM buffer at production Ddec/Dctx sizes.

    o_shape = jax.ShapeDtypeStruct((B, Tq, Ddec), output.dtype)
    o_spec = pl.BlockSpec((block_b, block_q, Ddec), lambda b, q: (b, q, 0))
    if return_attn:
        out_shape = (o_shape, jax.ShapeDtypeStruct((B, Tq, Tk), attn_dtype))
        out_specs = [o_spec,
                     pl.BlockSpec((block_b, block_q, Tk), lambda b, q: (b, q, 0))]
    else:
        out_shape = o_shape
        out_specs = o_spec

    kernel = functools.partial(_attention_kernel,
                               compute_dtype=compute_dtype,
                               approx_recip=bool(approx_recip))

    result = pl.pallas_call(
        kernel,
        out_shape=out_shape,
        grid_spec=pltpu.PrefetchScalarGridSpec(
            num_scalar_prefetch=0,
            grid=grid,
            in_specs=in_specs,
            out_specs=out_specs),
        compiler_params=pltpu.CompilerParams(
            dimension_semantics=("parallel", "parallel"),
            vmem_limit_bytes=vmem_limit),
        interpret=interpret,
    )(output, context, w_dec_c, b_dec, w_out_mix, w_out_q, b_out)

    if return_attn:
        out, attn = result
        return out, attn
    return result

    # TODO(synk): flash-style Tk chunking (online max/sum) for very large Tk is not
    # implemented; the full attention row must be materialized anyway when attn is
    # returned, as the module requires.


# ---------------------------------------------------------------------------
# Reference + self-test
# ---------------------------------------------------------------------------
def _reference(output, context, w_dec_t, b_dec, w_out_t, b_out):
    mapped = output @ w_dec_t + b_dec[None]                       # (B,Tq,Dctx)
    scores = jnp.einsum('bqd,bkd->bqk', mapped, context)          # (B,Tq,Tk)
    attn = jax.nn.softmax(scores, axis=-1)
    mix = jnp.einsum('bqk,bkd->bqd', attn, context)
    combined = jnp.concatenate([mix, output], axis=-1)
    out = jnp.tanh(combined @ w_out_t + b_out[None])
    return out, attn


if __name__ == "__main__":
    # Small, deterministic example (dec_cell_size = ctx_cell_size = 32).
    B, Tq, Tk = 2, 8, 16
    DEC, CTX = 32, 32

    key = jax.random.PRNGKey(0)
    k1, k2, k3, k4, k5, k6 = jax.random.split(key, 6)

    output = jax.random.normal(k1, (B, Tq, DEC), jnp.float32)
    context = jax.random.normal(k2, (B, Tk, CTX), jnp.float32)

    # Parameters (PyTorch nn.Linear stores weight as (out, in); we pass W^T).
    w_dec_t = 0.1 * jax.random.normal(k3, (DEC, CTX), jnp.float32)          # dec_w
    b_dec = 0.1 * jax.random.normal(k4, (1, CTX), jnp.float32)
    w_out_t = 0.1 * jax.random.normal(k5, (CTX + DEC, DEC), jnp.float32)    # linear_out
    b_out = 0.1 * jax.random.normal(k6, (1, DEC), jnp.float32)

    out_ref, attn_ref = _reference(output, context, w_dec_t, b_dec, w_out_t, b_out)

    # 1) f32 MXU-operand path (exact reciprocal) — tight tolerance.
    out, attn = attention_forward(output, context, w_dec_t, b_dec, w_out_t, b_out,
                                  compute_dtype=jnp.float32)
    jax.block_until_ready((out, attn))
    assert jnp.allclose(out, out_ref, atol=1e-5, rtol=1e-5), "f32 output mismatch"
    assert jnp.allclose(attn, attn_ref, atol=1e-5, rtol=1e-5), "f32 attn mismatch"

    # 2) bf16 MXU-operand path (f32 accumulation, approx reciprocal) — loose tolerance.
    out_bf, attn_bf = attention_forward(output, context, w_dec_t, b_dec, w_out_t, b_out,
                                        compute_dtype=jnp.bfloat16, approx_recip=True)
    jax.block_until_ready((out_bf, attn_bf))
    assert jnp.allclose(out_bf, out_ref, atol=5e-2, rtol=5e-2), "bf16 output mismatch"
    assert jnp.allclose(attn_bf, attn_ref, atol=5e-2, rtol=5e-2), "bf16 attn mismatch"

    # 3) attn-writeback-free variant (output only).
    out_only = attention_forward(output, context, w_dec_t, b_dec, w_out_t, b_out,
                                 compute_dtype=jnp.float32, return_attn=False)
    jax.block_until_ready(out_only)
    assert jnp.allclose(out_only, out_ref, atol=1e-5, rtol=1e-5), "no-attn output mismatch"

    # TODO(synk): 'dot' / 'cat' attention modes and the project=False variant are not
    # wired into the kernel (only the 'general' + project path is implemented).
    print("KERNEL_OK")
</pallas_src>

<mosaic_0001>
module attributes {stable_mosaic.version = 11 : i64} {
  func.func @_attention_kernel(%arg0: i32, %arg1: i32, %arg2: memref<2x8x32xf32, #tpu.memory_space<vmem>>, %arg3: memref<2x16x32xf32, #tpu.memory_space<vmem>>, %arg4: memref<32x32xf32, #tpu.memory_space<vmem>>, %arg5: memref<1x32xf32, #tpu.memory_space<vmem>>, %arg6: memref<32x32xf32, #tpu.memory_space<vmem>>, %arg7: memref<32x32xf32, #tpu.memory_space<vmem>>, %arg8: memref<1x32xf32, #tpu.memory_space<vmem>>, %arg9: memref<2x8x32xf32, #tpu.memory_space<vmem>>, %arg10: memref<2x8x16xf32, #tpu.memory_space<vmem>>) attributes {dimension_semantics = [#tpu.dimension_semantics<parallel>, #tpu.dimension_semantics<parallel>], iteration_bounds = array<i64: 1, 1>, scalar_prefetch = 0 : i64, scratch_operands = 0 : i64, tpu.core_type = #tpu.core_type<tc>, window_params = [{transform_indices = @transform_0, window_bounds = array<i64: 2, 8, 32>}, {transform_indices = @transform_1, window_bounds = array<i64: 2, 16, 32>}, {pipeline_mode = #tpu.pipeline_mode<synchronous>, transform_indices = @transform_2, window_bounds = array<i64: 32, 32>}, {pipeline_mode = #tpu.pipeline_mode<synchronous>, transform_indices = @transform_3, window_bounds = array<i64: 1, 32>}, {pipeline_mode = #tpu.pipeline_mode<synchronous>, transform_indices = @transform_4, window_bounds = array<i64: 32, 32>}, {pipeline_mode = #tpu.pipeline_mode<synchronous>, transform_indices = @transform_5, window_bounds = array<i64: 32, 32>}, {pipeline_mode = #tpu.pipeline_mode<synchronous>, transform_indices = @transform_6, window_bounds = array<i64: 1, 32>}, {transform_indices = @transform_7, window_bounds = array<i64: 2, 8, 32>}, {transform_indices = @transform_8, window_bounds = array<i64: 2, 8, 16>}]} {
    %c0 = arith.constant 0 : index
    %c0_0 = arith.constant 0 : index
    %c0_1 = arith.constant 0 : index
    %0 = vector.load %arg2[%c0, %c0_0, %c0_1] : memref<2x8x32xf32, #tpu.memory_space<vmem>>, vector<2x8x32xf32>
    %1 = vector.shape_cast %0 : vector<2x8x32xf32> to vector<16x32xf32>
    %c0_2 = arith.constant 0 : index
    %c0_3 = arith.constant 0 : index
    %c0_4 = arith.constant 0 : index
    %2 = vector.load %arg3[%c0_2, %c0_3, %c0_4] : memref<2x16x32xf32, #tpu.memory_space<vmem>>, vector<2x16x32xf32>
    %c0_5 = arith.constant 0 : index
    %c0_6 = arith.constant 0 : index
    %3 = vector.load %arg4[%c0_5, %c0_6] : memref<32x32xf32, #tpu.memory_space<vmem>>, vector<32x32xf32>
    %cst = arith.constant dense<0.000000e+00> : vector<16x32xf32>
    %4 = tpu.matmul %1, %3, %cst {dimension_numbers = #tpu.dot_dimension_numbers<[1], [0], [0], [1], [0, 0, 1, 1], [], []>} : vector<16x32xf32>, vector<32x32xf32>, vector<16x32xf32> -> vector<16x32xf32>
    %c0_7 = arith.constant 0 : index
    %c0_8 = arith.constant 0 : index
    %5 = vector.load %arg5[%c0_7, %c0_8] : memref<1x32xf32, #tpu.memory_space<vmem>>, vector<1x32xf32>
    %6 = vector.broadcast %5 : vector<1x32xf32> to vector<16x32xf32>
    %7 = arith.addf %4, %6 : vector<16x32xf32>
    %8 = vector.shape_cast %7 : vector<16x32xf32> to vector<2x8x32xf32>
    "tpu.trace_start"() <{level = 10 : i32, message = "bqd,bkd->bqk"}> : () -> ()
    %cst_9 = arith.constant dense<0.000000e+00> : vector<2x8x16xf32>
    %9 = tpu.matmul %8, %2, %cst_9 {dimension_numbers = #tpu.dot_dimension_numbers<[2], [2], [1], [1], [0, 0, 0, 1, 1, 1], [0], [0]>} : vector<2x8x32xf32>, vector<2x16x32xf32>, vector<2x8x16xf32> -> vector<2x8x16xf32>
    "tpu.trace_stop"() : () -> ()
    %cst_10 = arith.constant dense<0xFF800000> : vector<2x8xf32>
    %10 = vector.multi_reduction <maximumf>, %9, %cst_10 [2] : vector<2x8x16xf32> to vector<2x8xf32>
    %11 = vector.shape_cast %10 : vector<2x8xf32> to vector<2x8x1xf32>
    %12 = vector.broadcast %11 : vector<2x8x1xf32> to vector<2x8x16xf32>
    %13 = arith.subf %9, %12 : vector<2x8x16xf32>
    %14 = math.exp %13 : vector<2x8x16xf32>
    %cst_11 = arith.constant dense<0.000000e+00> : vector<2x8xf32>
    %15 = vector.multi_reduction <add>, %14, %cst_11 [2] : vector<2x8x16xf32> to vector<2x8xf32>
    %16 = vector.shape_cast %15 : vector<2x8xf32> to vector<2x8x1xf32>
    %cst_12 = arith.constant 1.000000e+00 : f32
    %17 = vector.broadcast %cst_12 : f32 to vector<2x8x1xf32>
    %18 = arith.divf %17, %16 : vector<2x8x1xf32>
    %19 = vector.broadcast %18 : vector<2x8x1xf32> to vector<2x8x16xf32>
    %20 = arith.mulf %14, %19 : vector<2x8x16xf32>
    %c0_13 = arith.constant 0 : index
    %c0_14 = arith.constant 0 : index
    %c0_15 = arith.constant 0 : index
    %21 = vector.load %arg10[%c0_13, %c0_14, %c0_15] : memref<2x8x16xf32, #tpu.memory_space<vmem>>, vector<2x8x16xf32>
    tpu.vector_store %arg10[%c0_13, %c0_14, %c0_15], %20 {strides = array<i32>} : memref<2x8x16xf32, #tpu.memory_space<vmem>>, vector<2x8x16xf32>,
    "tpu.trace_start"() <{level = 10 : i32, message = "bqk,bkd->bqd"}> : () -> ()
    %cst_16 = arith.constant dense<0.000000e+00> : vector<2x8x32xf32>
    %22 = tpu.matmul %20, %2, %cst_16 {dimension_numbers = #tpu.dot_dimension_numbers<[2], [1], [1], [2], [0, 0, 0, 1, 1, 2], [0], [0]>} : vector<2x8x16xf32>, vector<2x16x32xf32>, vector<2x8x32xf32> -> vector<2x8x32xf32>
    "tpu.trace_stop"() : () -> ()
    %23 = vector.shape_cast %22 : vector<2x8x32xf32> to vector<16x32xf32>
    %c0_17 = arith.constant 0 : index
    %c0_18 = arith.constant 0 : index
    %24 = vector.load %arg6[%c0_17, %c0_18] : memref<32x32xf32, #tpu.memory_space<vmem>>, vector<32x32xf32>
    %cst_19 = arith.constant dense<0.000000e+00> : vector<16x32xf32>
    %25 = tpu.matmul %23, %24, %cst_19 {dimension_numbers = #tpu.dot_dimension_numbers<[1], [0], [0], [1], [0, 0, 1, 1], [], []>} : vector<16x32xf32>, vector<32x32xf32>, vector<16x32xf32> -> vector<16x32xf32>
    %c0_20 = arith.constant 0 : index
    %c0_21 = arith.constant 0 : index
    %26 = vector.load %arg7[%c0_20, %c0_21] : memref<32x32xf32, #tpu.memory_space<vmem>>, vector<32x32xf32>
    %cst_22 = arith.constant dense<0.000000e+00> : vector<16x32xf32>
    %27 = tpu.matmul %1, %26, %cst_22 {dimension_numbers = #tpu.dot_dimension_numbers<[1], [0], [0], [1], [0, 0, 1, 1], [], []>} : vector<16x32xf32>, vector<32x32xf32>, vector<16x32xf32> -> vector<16x32xf32>
    %28 = arith.addf %25, %27 : vector<16x32xf32>
    %c0_23 = arith.constant 0 : index
    %c0_24 = arith.constant 0 : index
    %29 = vector.load %arg8[%c0_23, %c0_24] : memref<1x32xf32, #tpu.memory_space<vmem>>, vector<1x32xf32>
    %30 = vector.broadcast %29 : vector<1x32xf32> to vector<16x32xf32>
    %31 = arith.addf %28, %30 : vector<16x32xf32>
    %32 = math.tanh %31 : vector<16x32xf32>
    %33 = vector.shape_cast %32 : vector<16x32xf32> to vector<2x8x32xf32>
    %c0_25 = arith.constant 0 : index
    %c0_26 = arith.constant 0 : index
    %c0_27 = arith.constant 0 : index
    %34 = vector.load %arg9[%c0_25, %c0_26, %c0_27] : memref<2x8x32xf32, #tpu.memory_space<vmem>>, vector<2x8x32xf32>
    tpu.vector_store %arg9[%c0_25, %c0_26, %c0_27], %33 {strides = array<i32>} : memref<2x8x32xf32, #tpu.memory_space<vmem>>, vector<2x8x32xf32>,
    return
  }
  func.func @transform_0(%arg0: i32, %arg1: i32) -> (i32, i32, i32) {
    %c0_i32 = arith.constant 0 : i32
    %c0_i32_0 = arith.constant 0 : i32
    return %arg0, %arg1, %c0_i32 : i32, i32, i32
  }
  func.func @transform_1(%arg0: i32, %arg1: i32) -> (i32, i32, i32) {
    %c0_i32 = arith.constant 0 : i32
    %c0_i32_0 = arith.constant 0 : i32
    %c0_i32_1 = arith.constant 0 : i32
    return %arg0, %c0_i32, %c0_i32_0 : i32, i32, i32
  }
  func.func @transform_2(%arg0: i32, %arg1: i32) -> (i32, i32) {
    %c0_i32 = arith.constant 0 : i32
    %c0_i32_0 = arith.constant 0 : i32
    %c0_i32_1 = arith.constant 0 : i32
    return %c0_i32, %c0_i32_0 : i32, i32
  }
  func.func @transform_3(%arg0: i32, %arg1: i32) -> (i32, i32) {
    %c0_i32 = arith.constant 0 : i32
    %c0_i32_0 = arith.constant 0 : i32
    %c0_i32_1 = arith.constant 0 : i32
    return %c0_i32, %c0_i32_0 : i32, i32
  }
  func.func @transform_4(%arg0: i32, %arg1: i32) -> (i32, i32) {
    %c0_i32 = arith.constant 0 : i32
    %c0_i32_0 = arith.constant 0 : i32
    %c0_i32_1 = arith.constant 0 : i32
    return %c0_i32, %c0_i32_0 : i32, i32
  }
  func.func @transform_5(%arg0: i32, %arg1: i32) -> (i32, i32) {
    %c0_i32 = arith.constant 0 : i32
    %c0_i32_0 = arith.constant 0 : i32
    %c0_i32_1 = arith.constant 0 : i32
    return %c0_i32, %c0_i32_0 : i32, i32
  }
  func.func @transform_6(%arg0: i32, %arg1: i32) -> (i32, i32) {
    %c0_i32 = arith.constant 0 : i32
    %c0_i32_0 = arith.constant 0 : i32
    %c0_i32_1 = arith.constant 0 : i32
    return %c0_i32, %c0_i32_0 : i32, i32
  }
  func.func @transform_7(%arg0: i32, %arg1: i32) -> (i32, i32, i32) {
    %c0_i32 = arith.constant 0 : i32
    %c0_i32_0 = arith.constant 0 : i32
    return %arg0, %arg1, %c0_i32 : i32, i32, i32
  }
  func.func @transform_8(%arg0: i32, %arg1: i32) -> (i32, i32, i32) {
    %c0_i32 = arith.constant 0 : i32
    %c0_i32_0 = arith.constant 0 : i32
    return %arg0, %arg1, %c0_i32 : i32, i32, i32
  }
}

</mosaic_0001>

<bundles_post_ra>
// kernel: tpu_custom_call.1
= control target key start
LH: loop header
LB: loop body
LE: loop exit
PB: predicated region body
PF: predicated region fallthrough
CT: control target
= control target key end

     0   :  { %14 = vsyncpa [#allocation3], 0  ;;  %s769_s0 = inlined_call_operand.hbm [shape: f32[2,8,32], index: 0, kind: input, shape index: {}]   ;;  %s770_s1 = inlined_call_operand.hbm [shape: f32[2,16,32], index: 1, kind: input, shape index: {}]   ;;  %s771_s2 = inlined_call_operand.hbm [shape: f32[32,32], index: 2, kind: input, shape index: {}]   ;;  %s772_s3 = inlined_call_operand.vmem [shape: f32[1,32], index: 3, kind: input, shape index: {}]   ;;  %s773_s4 = inlined_call_operand.hbm [shape: f32[32,32], index: 4, kind: input, shape index: {}]   ;;  %s774_s5 = inlined_call_operand.hbm [shape: f32[32,32], index: 5, kind: input, shape index: {}]   ;;  %s775_s6 = inlined_call_operand.vmem [shape: f32[1,32], index: 6, kind: input, shape index: {}]   ;;  %s776_s7 = inlined_call_operand.hbm [shape: f32[2,8,32], index: 7, kind: output, shape index: {0}]   ;;  %s777_s8 = inlined_call_operand.hbm [shape: f32[2,8,16], index: 8, kind: output, shape index: {1}]  }
   0x1   :  { %15 = vsyncpa [#allocation6], 0 }
   0x2   :  { %16 = vsyncpa [#allocation9], 0 }
   0x3   :  { %17 = vsyncpa [#allocation4], 0 }
   0x4   :  { %18 = vsyncpa [#allocation13], 0  ;;  %s36_s29 = sshll.u32 %s770_s1, 4  ;;  %s637_s30 = smov [#allocation5]   ;;  %s37_s29 = int_to_ptr.hbm [resolvable:$true] %s36_s29 }
   0x5   :  { %s38_s9 = sshll.u32 %s637_s30, 4  ;;  %s64_s12 = sshll.u32 %s773_s4, 4  ;;  %s39_s9 = int_to_ptr.vmem [resolvable:$true] %s38_s9  ;;  %s65_s12 = int_to_ptr.hbm [resolvable:$true] %s64_s12 }
   0x6   :  { %s638_s13 = smov 128   ;;  %s639_s14 = smov 8  }
   0x7   :  { %44 = dma.hbm_to_vmem [thread:$0]  %s37_s29, 512, %s39_s9, [#allocation6], %s638_s13, %s638_s13, %s639_s14  }
   0x8   :  { %s640_s15 = smov [#allocation8]   ;;  %s23_s1 = sshll.u32 %s769_s0, 4  ;;  %s24_s1 = int_to_ptr.hbm [resolvable:$true] %s23_s1 }
   0x9   :  { %s66_s16 = sshll.u32 %s640_s15, 4  ;;  %s49_s20 = sshll.u32 %s771_s2, 4  ;;  %s67_s16 = int_to_ptr.vmem [resolvable:$true] %s66_s16  ;;  %s50_s20 = int_to_ptr.hbm [resolvable:$true] %s49_s20 }
   0xa   :  { %72 = dma.hbm_to_vmem [thread:$0]  %s65_s12, 512, %s67_s16, [#allocation9], %s638_s13, %s638_s13, %s639_s14  }
   0xb   :  { %s641_s21 = smov [#allocation2]   ;;  %s642_s23 = smov [#allocation7]  }
   0xc   :  { %s25_s22 = sshll.u32 %s641_s21, 4  ;;  %s51_s0 = sshll.u32 %s642_s23, 4  ;;  %s26_s22 = int_to_ptr.vmem [resolvable:$true] %s25_s22  ;;  %s52_s0 = int_to_ptr.vmem [resolvable:$true] %s51_s0 }
   0xd   :  { %31 = dma.hbm_to_vmem [thread:$0]  %s24_s1, 256, %s26_s22, [#allocation3], %s638_s13, %s638_s13, %s639_s14  }
   0xe   :  { %s77_s26 = sshll.u32 %s774_s5, 4  ;;  %s643_s2 = smov [#allocation10]   ;;  %s78_s26 = int_to_ptr.hbm [resolvable:$true] %s77_s26 }
   0xf   :  { %57 = dma.hbm_to_vmem [thread:$0]  %s50_s20, 512, %s52_s0, [#allocation6], %s638_s13, %s638_s13, %s639_s14  }
  0x10   :  { %s79_s27 = sshll.u32 %s643_s2, 4  ;;  %s80_s27 = int_to_ptr.vmem [resolvable:$true] %s79_s27 }
  0x11   :  { %85 = dma.hbm_to_vmem [thread:$0]  %s78_s26, 512, %s80_s27, [#allocation9], %s638_s13, %s638_s13, %s639_s14  }
  0x12   :  { %627 = dma.done.wait [#allocation3], 256  }
  0x13   :  { %628 = vsyncadd [#allocation3], 4294967040 }
  0x14   :  { %629 = dma.done.wait [#allocation6], 1024  }
  0x15   :  { %630 = vsyncadd [#allocation6], 4294966272 }
  0x16   :  { %631 = dma.done.wait [#allocation9], 1024  }
  0x17   :  { %632 = vsyncadd [#allocation9], 4294966272  ;;  %v117_v0 = vld [vmem:[#allocation7 + $0x18] sm:$0xff]  ;;  %v116_v1 = vld [vmem:[#allocation7 + $0x10] sm:$0xff]  ;;  %vm122_vm0 = vcmask 261120   ;;  %vm210_vm1 = vcmask 130048  }
  0x18   :  { %141 = vmatpush.msra.mxu0 %v117_v0  ;;  %v115_v2 = vld [vmem:[#allocation7 + $0x8] sm:$0xff]  ;;  %v114_v4 = vld [vmem:[#allocation7] sm:$0xff]  ;;  %v722_v5 = vld [vmem:[#allocation2] sm:$0xff]  ;;  %s398_s10 = sshll.u32 %s777_s8, 4  ;;  %s645_s8 = smov [#allocation11]   ;;  %s399_s10 = int_to_ptr.hbm [resolvable:$true] %s398_s10 }
  0x19   :  { %v111_v3 = vld [vmem:[#allocation5 + $0x8] sm:$0xff]  ;;  %v726_v6 = vld [vmem:[#allocation2 + $0x8] sm:$0xff]  ;;  %v110_v7 = vld [vmem:[#allocation5] sm:$0xff]  ;;  %s383_s15 = sshll.u32 %s645_s8, 4  ;;  %s385_s18 = sshll.u32 %s776_s7, 4  ;;  %s384_s15 = int_to_ptr.vmem [resolvable:$true] %s383_s15  ;;  %s386_s18 = int_to_ptr.hbm [resolvable:$true] %s385_s18 }
  0x1a   :  { %142 = vmatpush.msra.mxu0 %v116_v1  ;;  %420 = vmatpush.xpose.msk.msra.mxu1 %vm122_vm0, %v111_v3  ;;  %v113_v8 = vld [vmem:[#allocation5 + $0x18] sm:$0xff]  ;;  %v112_v9 = vld [vmem:[#allocation5 + $0x10] sm:$0xff]  ;;  %v310_v32 = vld [vmem:[#allocation8 + $0x8] sm:$0xff] }
  0x1b   :  { %280 = vmatpush.msra.mxu3 %v111_v3  ;;  %423 = vmatpush.xpose.msk.msra.mxu2 %vm122_vm0, %v113_v8  ;;  %v445_v10 = vld [vmem:[%s772_s3] ss:$0 sm:$0xff]  ;;  %v312_v30 = vld [vmem:[#allocation8 + $0x18] sm:$0xff]  ;;  %v309_v57 = vld [vmem:[#allocation8] sm:$0xff]  ;;  %s644_s3 = smov [#allocation12]  }
  0x1c   :  { %143 = vmatpush.msra.mxu0 %v115_v2  ;;  %v311_v31 = vld [vmem:[#allocation8 + $0x10] sm:$0xff]  ;;  %v316_v56 = vld [vmem:[#allocation10 + $0x18] sm:$0xff]  ;;  %v314_v59 = vld [vmem:[#allocation10 + $0x8] sm:$0xff]  ;;  %s396_s29 = sshll.u32 %s644_s3, 4  ;;  %s397_s29 = int_to_ptr.vmem [resolvable:$true] %s396_s29 }
  0x1d   :  { %281 = vmatpush.msra.mxu3 %v110_v7  ;;  %v315_v58 = vld [vmem:[#allocation10 + $0x10] sm:$0xff]  ;;  %v313_v60 = vld [vmem:[#allocation10] sm:$0xff] }
  0x1e   :  { %144 = vmatpush.msra.mxu0 %v114_v4  ;;  %421 = vmatpush.xpose.msk.msra.mxu1 %vm122_vm0, %v110_v7  ;;  %v446_v0 = vld [vmem:[%s775_s6] ss:$0 sm:$0xff] }
  0x1f   :  { %418 = vmatmul.msk.f32.vlgmr.msra.gmra.mxu0 %vm122_vm0, %v722_v5  ;;  %303 = vmatpush.msrb.mxu3 %v113_v8 }
  0x20   :  { %424 = vmatpush.xpose.msk.msra.mxu2 %vm122_vm0, %v112_v9 }
  0x21   :  { %304 = vmatpush.msrb.mxu3 %v112_v9 }
  0x22   :  { %329 = vmatpush.msrb.mxu1 %v316_v56 }
  0x24   :  { %358 = vmatpush.msrb.mxu2 %v312_v30  ;;  %330 = vmatpush.msrb.mxu1 %v315_v58 }
  0x26   :  { %359 = vmatpush.msrb.mxu2 %v311_v31  ;;  %331 = vmatpush.msrb.mxu1 %v314_v59 }
  0x27   :  { %419 = vmatmul.msk.f32.gmra.mxu0 %vm122_vm0, %v726_v6 }
  0x28   :  { %360 = vmatpush.msrb.mxu2 %v310_v32  ;;  %332 = vmatpush.msrb.mxu1 %v313_v60 }
  0x2a   :  { %361 = vmatpush.msrb.mxu2 %v309_v57 }
  0x9c   :  { %v146_v11 = vpop.f32.mrf.mxu0 }
  0x9d   :  { %v147_v12 = vadd.f32 %v445_v10, %v146_v11 }
  0x9f   :  { %422 = vmatmul.msk.f32.vlgmr.msra.gmra.mxu1 %vm122_vm0, %v147_v12 }
  0xa4   :  { %v149_v13 = vpop.f32.mrf.mxu0 }
  0xa5   :  { %v150_v14 = vadd.f32 %v445_v10, %v149_v13 }
  0xa7   :  { %425 = vmatmul.msk.f32.vlgmr.msra.gmra.mxu2 %vm122_vm0, %v150_v14  ;;  %428 = vmatmul.msk.f32.vlgmr.msrb.gmra.mxu1 %vm122_vm0, %v722_v5 }
 0x11c   :  { %v178_v15 = vpop.f32.mrf.mxu1 }
 0x11d   :  { %v211_v16 = vsel %vm210_vm1, %v178_v15, -inf }
 0x11e   :  { %212 = vmax.xlane.f32.xlu0 %v211_v16 }
 0x124   :  { %v334_v63 = vpop.f32.mrf.mxu1 }
 0x12a   :  { %v207_v17 = vpop.f32.mrf.mxu2 }
 0x12b   :  { %v214_v18 = vsel %vm210_vm1, %v207_v17, -inf }
 0x12c   :  { %215 = vmax.xlane.f32.xlu0 %v214_v18 }
 0x191   :  { %v213_v19 = vpop.xlane.xlu0 %212 }
 0x192   :  { %v217_v20 = vsub.f32 %v178_v15, %v213_v19 }
 0x194   :  { %v219_v21 = vmul.f32 1.442695, %v217_v20 }
 0x196   :  { %447 = vpow2.f32 %v219_v21 }
 0x19c   :  { %v448_v22 = vpop.eup %447 }
 0x19d   :  { %v223_v23 = vsel %vm210_vm1, %v448_v22, 0.0 }
 0x19e   :  { %224 = vadd.xlane.f32.xlu1 %v223_v23 }
 0x19f   :  { %v216_v24 = vpop.xlane.xlu0 %215 }
 0x1a0   :  { %v218_v25 = vsub.f32 %v207_v17, %v216_v24 }
 0x1a2   :  { %v221_v26 = vmul.f32 1.442695, %v218_v25 }
 0x1a4   :  { %449 = vpow2.f32 %v221_v26 }
 0x1aa   :  { %v450_v27 = vpop.eup %449 }
 0x1ab   :  { %v226_v28 = vsel %vm210_vm1, %v450_v27, 0.0 }
 0x1ac   :  { %227 = vadd.xlane.f32.xlu1 %v226_v28 }
 0x211   :  { %v225_v29 = vpop.xlane.xlu1 %224 }
 0x212   :  { %451 = vrcp.f32 %v225_v29  ;;  %v240_v36 = vand.u32 2147483648, %v225_v29  ;;  %v238_v38 = vand.u32 2147483647, %v225_v29  ;;  %vm234_vm3 = vweird.f32 %v225_v29 }
 0x214   :  { %v241_v41 = vor.u32 1.1754944e-38, %v240_v36  ;;  %vm239_vm5 = vcmp.eq.f32.partialorder %v238_v38, 8.507059e+37 }
 0x218   :  { %v452_v33 = vpop.eup %451 }
 0x219   :  { %v230_v34 = vmul.f32 %v452_v33, %v225_v29  ;;  %vm235_vm2 = vweird.f32 %v452_v33 }
 0x21a   :  { %vm236_vm4 = vmor %vm234_vm3, %vm235_vm2 }
 0x21b   :  { %v231_v35 = vsub.f32 1.0, %v230_v34 }
 0x21d   :  { %v232_v37 = vmul.f32 %v452_v33, %v231_v35 }
 0x21f   :  { %v228_v39 = vpop.xlane.xlu1 %227  ;;  %v233_v40 = vadd.f32 %v452_v33, %v232_v37 }
 0x220   :  { %453 = vrcp.f32 %v228_v39  ;;  %v255_v48 = vand.u32 2147483648, %v228_v39  ;;  %v253_v50 = vand.u32 2147483647, %v228_v39  ;;  %vm249_vm7 = vweird.f32 %v228_v39 }
 0x221   :  { %v237_v42 = vsel %vm236_vm4, %v452_v33, %v233_v40 }
 0x222   :  { %v242_v43 = vsel %vm239_vm5, %v241_v41, %v237_v42  ;;  %v256_v52 = vor.u32 1.1754944e-38, %v255_v48  ;;  %vm254_vm9 = vcmp.eq.f32.partialorder %v253_v50, 8.507059e+37 }
 0x223   :  { %v259_v44 = vmul.f32 %v448_v22, %v242_v43 }
 0x225   :  { %426 = vmatmul.msk.f32.vlgmr.msra.gmra.mxu3 %vm210_vm1, %v259_v44  ;;  %261 = vst.msk [vmem:[#allocation12] sm:$0xff] %vm210_vm1, %v259_v44 }
 0x226   :  { %v454_v45 = vpop.eup %453  ;;  %432 = vmatpush.msra.mxu3 %v316_v56 }
 0x227   :  { %v245_v46 = vmul.f32 %v454_v45, %v228_v39  ;;  %vm250_vm6 = vweird.f32 %v454_v45 }
 0x228   :  { %vm251_vm8 = vmor %vm249_vm7, %vm250_vm6  ;;  %433 = vmatpush.msra.mxu3 %v315_v58 }
 0x229   :  { %v246_v47 = vsub.f32 1.0, %v245_v46 }
 0x22a   :  { %434 = vmatpush.msra.mxu3 %v314_v59 }
 0x22b   :  { %v247_v49 = vmul.f32 %v454_v45, %v246_v47 }
 0x22c   :  { %435 = vmatpush.msra.mxu3 %v313_v60 }
 0x22d   :  { %v248_v51 = vadd.f32 %v454_v45, %v247_v49 }
 0x22f   :  { %v252_v53 = vsel %vm251_vm8, %v454_v45, %v248_v51 }
 0x230   :  { %v257_v54 = vsel %vm254_vm9, %v256_v52, %v252_v53 }
 0x231   :  { %v260_v55 = vmul.f32 %v450_v27, %v257_v54 }
 0x233   :  { %427 = vmatmul.msk.f32.vlgmr.msrb.gmra.mxu3 %vm210_vm1, %v260_v55  ;;  %262 = vst.msk [vmem:[#allocation12 + $0x8] sm:$0xff] %vm210_vm1, %v260_v55 }
 0x234   :  { %404 = dma.vmem_to_hbm [thread:$0]  %s397_s29, 256, %s399_s10, [#allocation13], %s638_s13, %s638_s13, %s639_s14  }
 0x23b   :  { %429 = vmatmul.msk.f32.vlgmr.msra.gmra.mxu3 %vm122_vm0, %v726_v6 }
 0x2a8   :  { %v283_v61 = vpop.f32.mrf.mxu3 }
 0x2a9   :  { %430 = vmatmul.msk.f32.vlgmr.msrb.gmra.mxu2 %vm122_vm0, %v283_v61 }
 0x2b6   :  { %v306_v62 = vpop.f32.mrf.mxu3 }
 0x2b7   :  { %431 = vmatmul.msk.f32.gmra.mxu2 %vm122_vm0, %v306_v62 }
 0x2be   :  { %v337_v5 = vpop.f32.mrf.mxu3 }
 0x32c   :  { %v363_v1 = vpop.f32.mrf.mxu2 }
 0x32d   :  { %v364_v2 = vadd.f32 %v363_v1, %v334_v63 }
 0x32f   :  { %v373_v3 = vadd.f32 %v446_v0, %v364_v2 }
 0x331   :  { %455 = vtanh.f32 %v373_v3 }
 0x337   :  { %v456_v4 = vpop.eup %455 }
 0x338   :  { %377 = vst.msk [vmem:[#allocation11] sm:$0xff] %vm122_vm0, %v456_v4 }
 0x33a   :  { %v366_v6 = vpop.f32.mrf.mxu2 }
 0x33b   :  { %v367_v7 = vadd.f32 %v366_v6, %v337_v5 }
 0x33d   :  { %v374_v8 = vadd.f32 %v446_v0, %v367_v7 }
 0x33f   :  { %457 = vtanh.f32 %v374_v8 }
 0x345   :  { %v458_v9 = vpop.eup %457 }
 0x346   :  { %378 = vst.msk [vmem:[#allocation11 + $0x8] sm:$0xff] %vm122_vm0, %v458_v9 }
 0x347   :  { %391 = dma.vmem_to_hbm [thread:$0]  %s384_s15, 256, %s386_s18, [#allocation4], %s638_s13, %s638_s13, %s639_s14  }
 0x348   :  { %633 = dma.done.wait [#allocation4], 256  }
 0x349   :  { %634 = vsyncadd [#allocation4], 4294967040 }
 0x34a   :  { %635 = dma.done.wait [#allocation13], 256  }
 0x34b   :  { %636 = vsyncadd [#allocation13], 4294967040 }
 0x34c   :  { %413 = vsyncpa [#allocation3], 1 }
 0x34d   :  { %414 = vsyncpa [#allocation6], 1 }
 0x34e   :  { %415 = vsyncpa [#allocation9], 1 }
 0x34f   :  { %416 = vsyncpa [#allocation4], 1 }
 0x350   :  { %417 = vsyncpa [#allocation13], 1 }

</bundles_post_ra>
